<compile_context>
chip_gen: v6e
topology: v6e:2x2x1
jax: 0.10.0
libtpu: 0.0.40
codegen_flags: <defaults>
</compile_context>

<pallas_src>
import jax
import jax.numpy as jnp
from jax.experimental import pallas as pl
from jax.experimental.pallas import tpu as pltpu


def domain_classifier_kernel(x_ref, w1_ref, b1_ref, w2_ref, b2_ref, o_ref):
    # GradientReversal forward == identity (x.clone()), so start from x.
    # fc1 + ReLU (MXU matmul, f32 accumulation)
    h = jnp.dot(x_ref[...], w1_ref[...], preferred_element_type=jnp.float32)
    h = jnp.maximum(h + b1_ref[...], 0.0)

    # fc2
    logits = jnp.dot(h, w2_ref[...], preferred_element_type=jnp.float32)
    logits = logits + b2_ref[...]

    # LogSoftmax over dim=1, closed form for 2 classes (no cross-lane
    # max/sum reductions):  out0 = -softplus(d), out1 = -softplus(-d),
    # d = l1 - l0, with the numerically stable softplus
    # softplus(t) = max(t, 0) + log1p(exp(-|t|)).
    d = logits[:, 1:2] - logits[:, 0:1]            # (TILE_B, 1)
    log_term = jnp.log1p(jnp.exp(-jnp.abs(d)))     # shared stable term
    out0 = -(jnp.maximum(d, 0.0) + log_term)
    out1 = -(jnp.maximum(-d, 0.0) + log_term)
    o_ref[...] = jnp.concatenate([out0, out1], axis=-1)


def _round_up(n, m):
    return ((n + m - 1) // m) * m


def domain_classifier(x, w1, b1, w2, b2, *, tile_b=1024, use_bf16=False):
    """x: (B, 128); w1: (128, 64); b1: (1, 64); w2: (64, 2); b2: (1, 2).

    Weights are stored pre-transposed as (in_features, out_features) so the
    kernel does plain x @ W + b on the MXU.
    """
    B, F = x.shape
    assert F == 128 and w1.shape == (128, 64) and w2.shape == (64, 2)

    b1 = b1.reshape(1, 64).astype(jnp.float32)
    b2 = b2.reshape(1, 2).astype(jnp.float32)
    w2 = w2.astype(jnp.float32)
    if use_bf16:
        # Halves HBM traffic on the dominant stream; f32 MXU accumulation.
        x = x.astype(jnp.bfloat16)
        w1 = w1.astype(jnp.bfloat16)
    else:
        x = x.astype(jnp.float32)
        w1 = w1.astype(jnp.float32)

    # Batch tiling: big tiles amortize the ~0.35us/step overhead; multiple of
    # 8 for sublane alignment.  Pad the batch so every tile is full (rows are
    # independent; padded rows are discarded after the call).
    tile_b = max(8, _round_up(min(tile_b, _round_up(B, 8)), 8))
    b_pad = _round_up(B, tile_b)
    if b_pad != B:
        x = jnp.pad(x, ((0, b_pad - B), (0, 0)))
    n_tiles = b_pad // tile_b

    x_bytes = b_pad * 128 * x.dtype.itemsize
    w_bytes = (w1.size * w1.dtype.itemsize + w2.size * 4
               + b1.size * 4 + b2.size * 4)
    cost = pl.CostEstimate(
        flops=2 * b_pad * (128 * 64 + 64 * 2),
        bytes_accessed=x_bytes + b_pad * 2 * 4 + w_bytes,
        transcendentals=2 * b_pad,
    )

    out = pl.pallas_call(
        domain_classifier_kernel,
        out_shape=jax.ShapeDtypeStruct((b_pad, 2), jnp.float32),
        grid=(n_tiles,),
        in_specs=[
            pl.BlockSpec((tile_b, 128), lambda i: (i, 0)),  # x: streamed tiles
            pl.BlockSpec((128, 64), lambda i: (0, 0)),      # w1: VMEM-resident
            pl.BlockSpec((1, 64), lambda i: (0, 0)),        # b1: VMEM-resident
            pl.BlockSpec((64, 2), lambda i: (0, 0)),        # w2: VMEM-resident
            pl.BlockSpec((1, 2), lambda i: (0, 0)),         # b2: VMEM-resident
        ],
        out_specs=pl.BlockSpec((tile_b, 2), lambda i: (i, 0)),
        compiler_params=pltpu.CompilerParams(
            dimension_semantics=("parallel",)),
        cost_estimate=cost,
    )(x, w1, b1, w2, b2)

    return out[:B] if b_pad != B else out


def reference(x, w1, b1, w2, b2):
    h = jnp.maximum(x @ w1 + b1, 0.0)
    logits = h @ w2 + b2
    return jax.nn.log_softmax(logits, axis=1)


if __name__ == "__main__":
    key = jax.random.PRNGKey(0)
    kx, k1, k2, k3, k4 = jax.random.split(key, 5)

    B = 8
    # Deterministic synthetic params (PyTorch shapes: fc1.weight (64,128),
    # fc2.weight (2,64); stored here pre-transposed as (in, out)).
    x  = jax.random.normal(kx, (B, 128), dtype=jnp.float32)
    w1 = jax.random.normal(k1, (128, 64), dtype=jnp.float32) * 0.05
    b1 = jax.random.normal(k2, (1, 64), dtype=jnp.float32) * 0.01
    w2 = jax.random.normal(k3, (64, 2), dtype=jnp.float32) * 0.05
    b2 = jax.random.normal(k4, (1, 2), dtype=jnp.float32) * 0.01

    # f32 path
    out = jax.block_until_ready(domain_classifier(x, w1, b1, w2, b2))
    ref = reference(x, w1, b1, w2, b2)
    assert out.shape == (B, 2)
    assert jnp.allclose(out, ref, atol=1e-5, rtol=1e-5)

    # Ragged batch (exercises the pad/slice tail handling)
    B2 = 13
    x2 = jax.random.normal(jax.random.PRNGKey(1), (B2, 128), dtype=jnp.float32)
    out2 = jax.block_until_ready(domain_classifier(x2, w1, b1, w2, b2))
    ref2 = reference(x2, w1, b1, w2, b2)
    assert out2.shape == (B2, 2)
    assert jnp.allclose(out2, ref2, atol=1e-5, rtol=1e-5)

    # bf16 fast path for the dominant x/w1 stream (looser tolerance).
    out_bf = jax.block_until_ready(
        domain_classifier(x, w1, b1, w2, b2, use_bf16=True))
    assert jnp.allclose(out_bf, ref, atol=3e-2, rtol=3e-2)

    print("KERNEL_OK")
</pallas_src>

<mosaic_0001>
module attributes {stable_mosaic.version = 11 : i64} {
  func.func @domain_classifier_kernel(%arg0: i32, %arg1: memref<8x128xf32, #tpu.memory_space<vmem>>, %arg2: memref<128x64xf32, #tpu.memory_space<vmem>>, %arg3: memref<1x64xf32, #tpu.memory_space<vmem>>, %arg4: memref<64x2xf32, #tpu.memory_space<vmem>>, %arg5: memref<1x2xf32, #tpu.memory_space<vmem>>, %arg6: memref<8x2xf32, #tpu.memory_space<vmem>>) attributes {dimension_semantics = [#tpu.dimension_semantics<parallel>], iteration_bounds = array<i64: 1>, scalar_prefetch = 0 : i64, scratch_operands = 0 : i64, tpu.core_type = #tpu.core_type<tc>, window_params = [{transform_indices = @transform_0, window_bounds = array<i64: 8, 128>}, {pipeline_mode = #tpu.pipeline_mode<synchronous>, transform_indices = @transform_1, window_bounds = array<i64: 128, 64>}, {pipeline_mode = #tpu.pipeline_mode<synchronous>, transform_indices = @transform_2, window_bounds = array<i64: 1, 64>}, {pipeline_mode = #tpu.pipeline_mode<synchronous>, transform_indices = @transform_3, window_bounds = array<i64: 64, 2>}, {pipeline_mode = #tpu.pipeline_mode<synchronous>, transform_indices = @transform_4, window_bounds = array<i64: 1, 2>}, {transform_indices = @transform_5, window_bounds = array<i64: 8, 2>}]} {
    %c0 = arith.constant 0 : index
    %c0_0 = arith.constant 0 : index
    %0 = vector.load %arg1[%c0, %c0_0] : memref<8x128xf32, #tpu.memory_space<vmem>>, vector<8x128xf32>
    %c0_1 = arith.constant 0 : index
    %c0_2 = arith.constant 0 : index
    %1 = vector.load %arg2[%c0_1, %c0_2] : memref<128x64xf32, #tpu.memory_space<vmem>>, vector<128x64xf32>
    %cst = arith.constant dense<0.000000e+00> : vector<8x64xf32>
    %2 = tpu.matmul %0, %1, %cst {dimension_numbers = #tpu.dot_dimension_numbers<[1], [0], [0], [1], [0, 0, 1, 1], [], []>} : vector<8x128xf32>, vector<128x64xf32>, vector<8x64xf32> -> vector<8x64xf32>
    %c0_3 = arith.constant 0 : index
    %c0_4 = arith.constant 0 : index
    %3 = vector.load %arg3[%c0_3, %c0_4] : memref<1x64xf32, #tpu.memory_space<vmem>>, vector<1x64xf32>
    %4 = vector.broadcast %3 : vector<1x64xf32> to vector<8x64xf32>
    %5 = arith.addf %2, %4 : vector<8x64xf32>
    %cst_5 = arith.constant 0.000000e+00 : f32
    %6 = vector.broadcast %cst_5 : f32 to vector<8x64xf32>
    %7 = arith.maximumf %5, %6 : vector<8x64xf32>
    %c0_6 = arith.constant 0 : index
    %c0_7 = arith.constant 0 : index
    %8 = vector.load %arg4[%c0_6, %c0_7] : memref<64x2xf32, #tpu.memory_space<vmem>>, vector<64x2xf32>
    %cst_8 = arith.constant dense<0.000000e+00> : vector<8x2xf32>
    %9 = tpu.matmul %7, %8, %cst_8 {dimension_numbers = #tpu.dot_dimension_numbers<[1], [0], [0], [1], [0, 0, 1, 1], [], []>} : vector<8x64xf32>, vector<64x2xf32>, vector<8x2xf32> -> vector<8x2xf32>
    %c0_9 = arith.constant 0 : index
    %c0_10 = arith.constant 0 : index
    %10 = vector.load %arg5[%c0_9, %c0_10] : memref<1x2xf32, #tpu.memory_space<vmem>>, vector<1x2xf32>
    %11 = vector.broadcast %10 : vector<1x2xf32> to vector<8x2xf32>
    %12 = arith.addf %9, %11 : vector<8x2xf32>
    %13 = vector.extract_strided_slice %12 {offsets = [0, 1], sizes = [8, 1], strides = [1, 1]} : vector<8x2xf32> to vector<8x1xf32>
    %14 = vector.extract_strided_slice %12 {offsets = [0, 0], sizes = [8, 1], strides = [1, 1]} : vector<8x2xf32> to vector<8x1xf32>
    %15 = arith.subf %13, %14 : vector<8x1xf32>
    %16 = math.absf %15 : vector<8x1xf32>
    %cst_11 = arith.constant 0.000000e+00 : f32
    %17 = vector.broadcast %cst_11 : f32 to vector<8x1xf32>
    %18 = arith.subf %17, %16 : vector<8x1xf32>
    %19 = math.exp %18 : vector<8x1xf32>
    %20 = math.log1p %19 : vector<8x1xf32>
    %cst_12 = arith.constant 0.000000e+00 : f32
    %21 = vector.broadcast %cst_12 : f32 to vector<8x1xf32>
    %22 = arith.maximumf %15, %21 : vector<8x1xf32>
    %23 = arith.addf %22, %20 : vector<8x1xf32>
    %cst_13 = arith.constant 0.000000e+00 : f32
    %24 = vector.broadcast %cst_13 : f32 to vector<8x1xf32>
    %25 = arith.subf %24, %23 : vector<8x1xf32>
    %cst_14 = arith.constant 0.000000e+00 : f32
    %26 = vector.broadcast %cst_14 : f32 to vector<8x1xf32>
    %27 = arith.subf %26, %15 : vector<8x1xf32>
    %cst_15 = arith.constant 0.000000e+00 : f32
    %28 = vector.broadcast %cst_15 : f32 to vector<8x1xf32>
    %29 = arith.maximumf %27, %28 : vector<8x1xf32>
    %30 = arith.addf %29, %20 : vector<8x1xf32>
    %cst_16 = arith.constant 0.000000e+00 : f32
    %31 = vector.broadcast %cst_16 : f32 to vector<8x1xf32>
    %32 = arith.subf %31, %30 : vector<8x1xf32>
    %33 = tpu.concatenate %25, %32 in 1 : vector<8x1xf32>, vector<8x1xf32> -> vector<8x2xf32>
    %c0_17 = arith.constant 0 : index
    %c0_18 = arith.constant 0 : index
    %34 = vector.load %arg6[%c0_17, %c0_18] : memref<8x2xf32, #tpu.memory_space<vmem>>, vector<8x2xf32>
    tpu.vector_store %arg6[%c0_17, %c0_18], %33 {strides = array<i32>} : memref<8x2xf32, #tpu.memory_space<vmem>>, vector<8x2xf32>,
    return
  }
  func.func @transform_0(%arg0: i32) -> (i32, i32) {
    %c0_i32 = arith.constant 0 : i32
    %c0_i32_0 = arith.constant 0 : i32
    return %arg0, %c0_i32 : i32, i32
  }
  func.func @transform_1(%arg0: i32) -> (i32, i32) {
    %c0_i32 = arith.constant 0 : i32
    %c0_i32_0 = arith.constant 0 : i32
    %c0_i32_1 = arith.constant 0 : i32
    return %c0_i32, %c0_i32_0 : i32, i32
  }
  func.func @transform_2(%arg0: i32) -> (i32, i32) {
    %c0_i32 = arith.constant 0 : i32
    %c0_i32_0 = arith.constant 0 : i32
    %c0_i32_1 = arith.constant 0 : i32
    return %c0_i32, %c0_i32_0 : i32, i32
  }
  func.func @transform_3(%arg0: i32) -> (i32, i32) {
    %c0_i32 = arith.constant 0 : i32
    %c0_i32_0 = arith.constant 0 : i32
    %c0_i32_1 = arith.constant 0 : i32
    return %c0_i32, %c0_i32_0 : i32, i32
  }
  func.func @transform_4(%arg0: i32) -> (i32, i32) {
    %c0_i32 = arith.constant 0 : i32
    %c0_i32_0 = arith.constant 0 : i32
    %c0_i32_1 = arith.constant 0 : i32
    return %c0_i32, %c0_i32_0 : i32, i32
  }
  func.func @transform_5(%arg0: i32) -> (i32, i32) {
    %c0_i32 = arith.constant 0 : i32
    %c0_i32_0 = arith.constant 0 : i32
    return %arg0, %c0_i32 : i32, i32
  }
}

</mosaic_0001>

<bundles_post_ra>
// kernel: tpu_custom_call.1
= control target key start
LH: loop header
LB: loop body
LE: loop exit
PB: predicated region body
PF: predicated region fallthrough
CT: control target
= control target key end

     0   :  { %v332_v0 = vmov 0.0   ;;  %vm333_vm0 = vmmov 0   ;;  %vm130_vm1 = vcmask 523264   ;;  %s334_s20 = smov 1   ;;  %vm233_vm3 = vcmask 7168   ;;  %s476_s1 = inlined_call_operand.vmem [shape: f32[128,64], index: 1, kind: input, shape index: {}]   ;;  %s477_s3 = inlined_call_operand.vmem [shape: f32[64,2], index: 3, kind: input, shape index: {}]   ;;  %s478_s0 = inlined_call_operand.vmem [shape: f32[8,128], index: 0, kind: input, shape index: {}]   ;;  %s479_s2 = inlined_call_operand.vmem [shape: f32[1,64], index: 2, kind: input, shape index: {}]   ;;  %s480_s4 = inlined_call_operand.vmem [shape: f32[1,2], index: 4, kind: input, shape index: {}]   ;;  %s481_s5 = inlined_call_operand.vmem [shape: f32[8,2], index: 5, kind: output, shape index: {}]  }
   0x1   :  { %270 = vmatprep.subr.mxu0 %v332_v0  ;;  %v36_v1 = vld [vmem:[%s476_s1 + $0x78] sm:$0xff]  ;;  %v35_v2 = vld [vmem:[%s476_s1 + $0x70] sm:$0xff]  ;;  %302 = vmatprep.mubr.msk.f32.mxu0 %vm333_vm0, %v332_v0  ;;  %v34_v3 = vld [vmem:[%s476_s1 + $0x68] sm:$0xff]  ;;  %vm235_vm4 = vcmask 15360  }
   0x2   :  { %271 = vmatpush3.msra.mxu0 %v36_v1  ;;  %305 = vmatprep.subr.mxu1 %v332_v0  ;;  %v33_v4 = vld [vmem:[%s476_s1 + $0x60] sm:$0xff]  ;;  %v122_v5 = vld [vmem:[%s477_s3 + $0x38] sm:$0xff]  ;;  %v121_v7 = vld [vmem:[%s477_s3 + $0x30] sm:$0xff] }
   0x3   :  { %272 = vmatprep.subr.mxu0 %v332_v0  ;;  %321 = vmatprep.mubr.msk.f32.mxu1 %vm333_vm0, %v332_v0  ;;  %v32_v6 = vld [vmem:[%s476_s1 + $0x58] sm:$0xff]  ;;  %v120_v8 = vld [vmem:[%s477_s3 + $0x28] sm:$0xff]  ;;  %v31_v9 = vld [vmem:[%s476_s1 + $0x50] sm:$0xff] }
   0x4   :  { %273 = vmatpush3.msra.mxu0 %v35_v2  ;;  %306 = vmatpush3.msra.mxu1 %v122_v5  ;;  %v119_v10 = vld [vmem:[%s477_s3 + $0x20] sm:$0xff]  ;;  %v30_v11 = vld [vmem:[%s476_s1 + $0x48] sm:$0xff]  ;;  %v118_v12 = vld [vmem:[%s477_s3 + $0x18] sm:$0xff] }
   0x5   :  { %274 = vmatprep.subr.mxu0 %v332_v0  ;;  %307 = vmatprep.subr.mxu1 %v332_v0  ;;  %v29_v13 = vld [vmem:[%s476_s1 + $0x40] sm:$0xff]  ;;  %v28_v14 = vld [vmem:[%s476_s1 + $0x38] sm:$0xff]  ;;  %v27_v15 = vld [vmem:[%s476_s1 + $0x30] sm:$0xff] }
   0x6   :  { %275 = vmatpush3.msra.mxu0 %v34_v3  ;;  %308 = vmatpush3.msra.mxu1 %v121_v7  ;;  %v26_v16 = vld [vmem:[%s476_s1 + $0x28] sm:$0xff]  ;;  %v25_v17 = vld [vmem:[%s476_s1 + $0x20] sm:$0xff]  ;;  %v24_v18 = vld [vmem:[%s476_s1 + $0x18] sm:$0xff] }
   0x7   :  { %276 = vmatprep.subr.mxu0 %v332_v0  ;;  %309 = vmatprep.subr.mxu1 %v332_v0  ;;  %v23_v19 = vld [vmem:[%s476_s1 + $0x10] sm:$0xff]  ;;  %v22_v20 = vld [vmem:[%s476_s1 + $0x8] sm:$0xff]  ;;  %v21_v21 = vld [vmem:[%s476_s1] sm:$0xff] }
   0x8   :  { %277 = vmatpush3.msra.mxu0 %v33_v4  ;;  %310 = vmatpush3.msra.mxu1 %v120_v8  ;;  %v20_v22 = vld [vmem:[%s478_s0] sm:$0xff]  ;;  %v117_v23 = vld [vmem:[%s477_s3 + $0x10] sm:$0xff]  ;;  %v116_v24 = vld [vmem:[%s477_s3 + $0x8] sm:$0xff] }
   0x9   :  { %278 = vmatprep.subr.mxu0 %v332_v0  ;;  %311 = vmatprep.subr.mxu1 %v332_v0  ;;  %v115_v25 = vld [vmem:[%s477_s3] sm:$0xff] }
   0xa   :  { %279 = vmatpush3.msra.mxu0 %v32_v6  ;;  %312 = vmatpush3.msra.mxu1 %v119_v10  ;;  %v241_v26 = vld [vmem:[%s479_s2] ss:$0 sm:$0xff]  ;;  %s335_s2 = smov 127  }
   0xb   :  { %280 = vmatprep.subr.mxu0 %v332_v0  ;;  %313 = vmatprep.subr.mxu1 %v332_v0  ;;  %v242_v31 = vld [vmem:[%s480_s4] ss:$0 sm:$0xff] }
   0xc   :  { %281 = vmatpush3.msra.mxu0 %v31_v9  ;;  %314 = vmatpush3.msra.mxu1 %v118_v12 }
   0xd   :  { %282 = vmatprep.subr.mxu0 %v332_v0  ;;  %315 = vmatprep.subr.mxu1 %v332_v0 }
   0xe   :  { %283 = vmatpush3.msra.mxu0 %v30_v11  ;;  %316 = vmatpush3.msra.mxu1 %v117_v23 }
   0xf   :  { %284 = vmatprep.subr.mxu0 %v332_v0  ;;  %317 = vmatprep.subr.mxu1 %v332_v0 }
  0x10   :  { %285 = vmatpush3.msra.mxu0 %v29_v13  ;;  %318 = vmatpush3.msra.mxu1 %v116_v24 }
  0x11   :  { %286 = vmatprep.subr.mxu0 %v332_v0  ;;  %319 = vmatprep.subr.mxu1 %v332_v0 }
  0x12   :  { %287 = vmatpush3.msra.mxu0 %v28_v14  ;;  %320 = vmatpush3.msra.mxu1 %v115_v25 }
  0x13   :  { %288 = vmatprep.subr.mxu0 %v332_v0 }
  0x14   :  { %289 = vmatpush3.msra.mxu0 %v27_v15 }
  0x15   :  { %290 = vmatprep.subr.mxu0 %v332_v0 }
  0x16   :  { %291 = vmatpush3.msra.mxu0 %v26_v16 }
  0x17   :  { %292 = vmatprep.subr.mxu0 %v332_v0 }
  0x18   :  { %293 = vmatpush3.msra.mxu0 %v25_v17 }
  0x19   :  { %294 = vmatprep.subr.mxu0 %v332_v0 }
  0x1a   :  { %295 = vmatpush3.msra.mxu0 %v24_v18 }
  0x1b   :  { %296 = vmatprep.subr.mxu0 %v332_v0 }
  0x1c   :  { %297 = vmatpush3.msra.mxu0 %v23_v19 }
  0x1d   :  { %298 = vmatprep.subr.mxu0 %v332_v0 }
  0x1e   :  { %299 = vmatpush3.msra.mxu0 %v22_v20 }
  0x1f   :  { %300 = vmatprep.subr.mxu0 %v332_v0 }
  0x20   :  { %301 = vmatpush3.msra.mxu0 %v21_v21 }
  0x21   :  { %303 = vmatmul.mubr.f32.vlgmr.msra.gmra.mxu0 %v20_v22 }
  0xe1   :  { %v110_v27 = vpop.f32.mrf.mxu0 }
  0xe2   :  { %v111_v28 = vadd.f32 %v241_v26, %v110_v27 }
  0xe3   :  { %v304_v29 = vpop.f32.mrf.mxu0 }
  0xe4   :  { %v114_v30 = vmax.f32 %v111_v28, 0.0 }
  0xe6   :  { %322 = vmatmul.mubr.msk.f32.vlgmr.msra.gmra.mxu1 %vm130_vm1, %v114_v30 }
 0x1a6   :  { %v200_v32 = vpop.f32.mrf.mxu1 }
 0x1a7   :  { %v201_v33 = vadd.f32 %v242_v31, %v200_v32 }
 0x1a8   :  { %v323_v34 = vpop.f32.mrf.mxu1 }
 0x1a9   :  { %205 = vrot.lane.b32.xlu0 %v201_v33, %s334_s20 }
 0x21b   :  { %v206_v35 = vpop.permute.xlu0 %205 }
 0x21c   :  { %v208_v36 = vsub.f32 %v201_v33, %v206_v35 }
 0x21e   :  { %v209_v37 = vand.u32 2147483647, %v208_v36  ;;  %v225_v44 = vsub.f32 0.0, %v208_v36  ;;  %v222_v49 = vmax.f32 %v208_v36, 0.0 }
 0x220   :  { %v210_v38 = vsub.f32 0.0, %v209_v37  ;;  %v226_v50 = vmax.f32 %v225_v44, 0.0 }
 0x222   :  { %v211_v39 = vmul.f32 1.442695, %v210_v38 }
 0x224   :  { %328 = vpow2.f32 %v211_v39 }
 0x231   :  { %v329_v40 = vpop.eup %328 }
 0x232   :  { %v213_v41 = vadd.f32 1.0, %v329_v40  ;;  %v216_v42 = vmul.f32 -0.5, %v329_v40  ;;  %v219_v45 = vand.u32 2147483647, %v329_v40 }
 0x234   :  { %330 = vlog2.f32 %v213_v41  ;;  %v217_v43 = vadd.f32 1.0, %v216_v42  ;;  %vm220_vm2 = vcmp.lt.f32.partialorder %v219_v45, 0.0004427343 }
 0x236   :  { %v218_v48 = vmul.f32 %v329_v40, %v217_v43 }
 0x241   :  { %v331_v46 = vpop.eup %330 }
 0x242   :  { %v215_v47 = vmul.f32 0.6931472, %v331_v46 }
 0x244   :  { %v221_v51 = vsel %vm220_vm2, %v218_v48, %v215_v47 }
 0x245   :  { %v223_v52 = vadd.f32 %v222_v49, %v221_v51  ;;  %v227_v53 = vadd.f32 %v226_v50, %v221_v51 }
 0x247   :  { %v224_v54 = vsub.f32 0.0, %v223_v52  ;;  %v228_v55 = vsub.f32 0.0, %v227_v53 }
 0x249   :  { %230 = vrot.lane.b32.xlu0 %v224_v54, %s335_s2 }
 0x2bb   :  { %v231_v56 = vpop.permute.xlu0 %230 }
 0x2bc   :  { %v234_v57 = vsel %vm233_vm3, %v231_v56, %v228_v55 }
 0x2bd   :  { %236 = vst.msk [vmem:[%s481_s5] sm:$0xff] %vm235_vm4, %v234_v57 }

</bundles_post_ra>
